<compile_context>
chip_gen: v5e
topology: v5e:2x2
jax: 0.10.0
libtpu: 0.0.40
codegen_flags: <defaults>
</compile_context>

<pallas_src>
import functools

import jax
import jax.numpy as jnp
from jax.experimental import pallas as pl
from jax.experimental.pallas import tpu as pltpu

INPUT_SIZE = 512   # CLIPNSFWDetector.INPUT_SIZE (CLIP embedding dim)
INNER_SIZE = 32    # PortedCLIPClassifier.INNER_SIZE
HIDDEN = 64        # synthetic vision hidden width (stand-in for CLIP ViT width)
PATCH = 8          # synthetic patch size

# Per-block VMEM budget for the streamed patches operand (bf16).  Double
# buffering (2x) plus the transient f32 reduction value (2x more) stays well
# under v7x's 64 MiB VMEM; v5e/v6e (128 MiB) are trivially safe.
_BLOCK_BUDGET_BYTES = 4 * 1024 * 1024
_VMEM_LIMIT_BYTES = 48 * 1024 * 1024


def _round_up(x: int, m: int) -> int:
    return -(-x // m) * m


def _nsfw_kernel(patches_ref, wvis_ref,
                 w1_ref, b1_ref, w2_ref, b2_ref, w3_ref, b3_ref,
                 out_ref, acc_ref, *, inv_num_patches):
    """grid = (batch_tiles, patch_tiles); patch axis (last) is the reduction axis."""
    j = pl.program_id(1)

    @pl.when(j == 0)
    def _init():
        acc_ref[...] = jnp.zeros_like(acc_ref)

    # ---- streaming mean-pool over patches ----
    # Block is [TP, TB, dp] (patch axis is the leading/outer dim), so this is a
    # pure VPU accumulation (vreg adds), not a cross-sublane XLU reduce.
    acc_ref[...] += jnp.sum(patches_ref[...].astype(jnp.float32), axis=0)

    @pl.when(j == pl.num_programs(1) - 1)
    def _finalize():
        # TODO(synk): the pretrained CLIP ViT encoder (attention blocks,
        # layernorms, class token) cannot be reproduced without its checkpoint;
        # it is replaced by patch-embed -> mean-pool -> visual-projection,
        # which (being linear) is folded into the single W_vis matmul below.
        mean_p = (acc_ref[...] * inv_num_patches).astype(jnp.bfloat16)    # [TB, dp]
        emb = jnp.dot(mean_p, wvis_ref[...],
                      preferred_element_type=jnp.float32)                 # [TB, 512]

        # torch.nn.functional.normalize(emb, dim=1) (p=2), via rsqrt (EUP).
        sumsq = jnp.sum(emb * emb, axis=1, keepdims=True)                 # [TB, 1]
        emb = emb * jax.lax.rsqrt(jnp.maximum(sumsq, 1e-24))

        # PortedCLIPClassifier (category_mapper / mean / std pre-folded into w1/b1).
        x = jnp.dot(emb, w1_ref[...], preferred_element_type=jnp.float32) + b1_ref[...]
        x = jnp.maximum(x, 0.0)
        x = jnp.dot(x, w2_ref[...], preferred_element_type=jnp.float32) + b2_ref[...]
        x = jnp.maximum(x, 0.0)
        x = jnp.dot(x, w3_ref[...], preferred_element_type=jnp.float32) + b3_ref[...]
        out_ref[...] = jax.nn.sigmoid(x)                                  # [TB, 1]


def init_params(key):
    ks = jax.random.split(key, 9)
    patch_dim = 3 * PATCH * PATCH
    # synthetic CLIP vision weights
    w_patch = 0.02 * jax.random.normal(ks[0], (patch_dim, HIDDEN), jnp.float32)
    w_proj = 0.02 * jax.random.normal(ks[1], (HIDDEN, INPUT_SIZE), jnp.float32)
    # PortedCLIPClassifier buffers / weights (nn.Linear weight is [out, in])
    category_mapper = jnp.ones((1, INPUT_SIZE), jnp.float32)
    mean = 0.1 * jax.random.normal(ks[2], (1, INPUT_SIZE), jnp.float32)
    std = jnp.abs(jax.random.normal(ks[3], (1, INPUT_SIZE), jnp.float32)) + 0.5
    w1 = (INPUT_SIZE ** -0.5) * jax.random.normal(ks[4], (INNER_SIZE, INPUT_SIZE), jnp.float32)
    w2 = (INNER_SIZE ** -0.5) * jax.random.normal(ks[5], (INNER_SIZE, INNER_SIZE), jnp.float32)
    w3 = (INNER_SIZE ** -0.5) * jax.random.normal(ks[6], (1, INNER_SIZE), jnp.float32)
    b1 = 0.01 * jax.random.normal(ks[7], (1, INNER_SIZE), jnp.float32)
    b2 = 0.01 * jax.random.normal(ks[8], (1, INNER_SIZE), jnp.float32)
    b3 = jnp.zeros((1, 1), jnp.float32)

    # Fold the linear vision path: patch-embed -> mean-pool -> projection has
    # no nonlinearity, so it collapses to one [patch_dim, 512] matmul (bf16).
    w_vis = jnp.dot(w_patch, w_proj).astype(jnp.bfloat16)                # [192, 512]

    # Fold category_mapper / mean / std standardization into linear_1:
    #   y1 = ((emb*cat - mean)/std) @ W1^T + b1
    #      =  emb @ (diag(cat/std) @ W1^T) + (b1 - (mean/std) @ W1^T)
    scale = category_mapper / std                                        # [1, 512]
    shift = mean / std                                                   # [1, 512]
    w1t = w1.T                                                           # [512, 32]
    w1_folded = w1t * scale.T                                            # [512, 32]
    b1_folded = b1 - jnp.dot(shift, w1t)                                 # [1, 32]

    return {
        'w_vis': w_vis,
        'w1': w1_folded, 'b1': b1_folded,
        'w2': w2.T, 'b2': b2,
        'w3': w3.T, 'b3': b3,
    }


@jax.jit
def clip_nsfw_forward(x, params):
    B, C, H, W = x.shape
    ph = pw = PATCH
    nh, nw = H // ph, W // pw
    P = nh * nw
    dp = C * ph * pw                                                     # 192

    # NCHW -> patch-major [P, B, dp] bf16.  Under jit this reshape/transpose/
    # cast(+pad) fuses into one XLA copy pass; the kernel then streams bf16.
    patches = x.reshape(B, C, nh, ph, nw, pw).transpose(2, 4, 0, 1, 3, 5)
    patches = patches.reshape(P, B, dp).astype(jnp.bfloat16)

    # ---- tile selection (static Python ints) ----
    B8 = _round_up(B, 8)
    if B8 >= 16:
        # >= 2 batch-grid steps so the "parallel" axis shards across v7x's two
        # TensorCores (no-op on single-TC v5e/v6e); TB multiple of 8, <= 128.
        TB = min(128, max(8, (B8 // 2) // 8 * 8))
    else:
        TB = B8
    B_pad = _round_up(B, TB)

    tp_budget = max(8, _BLOCK_BUDGET_BYTES // (TB * dp * 2) // 8 * 8)
    P8 = _round_up(P, 8)
    TP = min(P8, tp_budget)
    P_pad = _round_up(P, TP)

    if (P_pad, B_pad) != (P, B):
        # Zero padding: padded patches add 0 to the sum (mean uses true P);
        # padded batch rows are sliced off below.
        patches = jnp.pad(patches, ((0, P_pad - P), (0, B_pad - B), (0, 0)))

    grid = (B_pad // TB, P_pad // TP)

    kernel = functools.partial(_nsfw_kernel, inv_num_patches=1.0 / float(P))

    weights = (params['w_vis'], params['w1'], params['b1'],
               params['w2'], params['b2'], params['w3'], params['b3'])

    def _const_spec(a):
        nd = a.ndim
        return pl.BlockSpec(a.shape, lambda i, j, _nd=nd: (0,) * _nd)

    in_specs = ([pl.BlockSpec((TP, TB, dp), lambda i, j: (j, i, 0))] +
                [_const_spec(w) for w in weights])

    out = pl.pallas_call(
        kernel,
        out_shape=jax.ShapeDtypeStruct((B_pad, 1), jnp.float32),
        grid=grid,
        in_specs=in_specs,
        out_specs=pl.BlockSpec((TB, 1), lambda i, j: (i, 0)),
        scratch_shapes=[pltpu.VMEM((TB, dp), jnp.float32)],
        compiler_params=pltpu.CompilerParams(
            dimension_semantics=("parallel", "arbitrary"),
            vmem_limit_bytes=_VMEM_LIMIT_BYTES),
    )(patches, *weights)

    return out[:B]


def reference_forward(x, params):
    """Plain-JAX reference mirroring the kernel's casts (sanity check only)."""
    B, C, H, W = x.shape
    nh, nw = H // PATCH, W // PATCH
    P = nh * nw
    dp = C * PATCH * PATCH
    patches = x.reshape(B, C, nh, PATCH, nw, PATCH).transpose(0, 2, 4, 1, 3, 5)
    patches = patches.reshape(B, P, dp).astype(jnp.bfloat16).astype(jnp.float32)
    mean_p = jnp.mean(patches, axis=1).astype(jnp.bfloat16).astype(jnp.float32)
    emb = mean_p @ params['w_vis'].astype(jnp.float32)
    emb = emb * jax.lax.rsqrt(
        jnp.maximum(jnp.sum(emb * emb, axis=1, keepdims=True), 1e-24))
    h = jnp.maximum(emb @ params['w1'] + params['b1'], 0.0)
    h = jnp.maximum(h @ params['w2'] + params['b2'], 0.0)
    y = h @ params['w3'] + params['b3']
    return jax.nn.sigmoid(y)


if __name__ == "__main__":
    key = jax.random.PRNGKey(0)
    k_x, k_p = jax.random.split(key)
    # small image batch: [B, C, H, W] = [2, 3, 32, 32] -> 16 patches of 8x8
    x = jax.random.normal(k_x, (2, 3, 32, 32), jnp.float32)
    params = init_params(k_p)

    y = clip_nsfw_forward(x, params)
    y = jax.block_until_ready(y)

    y_ref = reference_forward(x, params)

    assert y.shape == (2, 1) and y.dtype == jnp.float32
    assert bool(jnp.all((y >= 0.0) & (y <= 1.0)))
    assert bool(jnp.allclose(y, y_ref, atol=2e-2, rtol=2e-2))
    print("KERNEL_OK")
</pallas_src>

<mosaic_0001>
module attributes {stable_mosaic.version = 11 : i64} {
  func.func @_nsfw_kernel(%arg0: i32, %arg1: i32, %arg2: memref<16x8x192xbf16, #tpu.memory_space<vmem>>, %arg3: memref<192x512xbf16, #tpu.memory_space<vmem>>, %arg4: memref<512x32xf32, #tpu.memory_space<vmem>>, %arg5: memref<1x32xf32, #tpu.memory_space<vmem>>, %arg6: memref<32x32xf32, #tpu.memory_space<vmem>>, %arg7: memref<1x32xf32, #tpu.memory_space<vmem>>, %arg8: memref<32x1xf32, #tpu.memory_space<vmem>>, %arg9: memref<1x1xf32, #tpu.memory_space<vmem>>, %arg10: memref<8x1xf32, #tpu.memory_space<vmem>>, %arg11: memref<8x192xf32, #tpu.memory_space<vmem>>) attributes {dimension_semantics = [#tpu.dimension_semantics<parallel>, #tpu.dimension_semantics<arbitrary>], iteration_bounds = array<i64: 1, 1>, scalar_prefetch = 0 : i64, scratch_operands = 1 : i64, tpu.core_type = #tpu.core_type<tc>, window_params = [{transform_indices = @transform_0, window_bounds = array<i64: 16, 8, 192>}, {pipeline_mode = #tpu.pipeline_mode<synchronous>, transform_indices = @transform_1, window_bounds = array<i64: 192, 512>}, {pipeline_mode = #tpu.pipeline_mode<synchronous>, transform_indices = @transform_2, window_bounds = array<i64: 512, 32>}, {pipeline_mode = #tpu.pipeline_mode<synchronous>, transform_indices = @transform_3, window_bounds = array<i64: 1, 32>}, {pipeline_mode = #tpu.pipeline_mode<synchronous>, transform_indices = @transform_4, window_bounds = array<i64: 32, 32>}, {pipeline_mode = #tpu.pipeline_mode<synchronous>, transform_indices = @transform_5, window_bounds = array<i64: 1, 32>}, {pipeline_mode = #tpu.pipeline_mode<synchronous>, transform_indices = @transform_6, window_bounds = array<i64: 32, 1>}, {pipeline_mode = #tpu.pipeline_mode<synchronous>, transform_indices = @transform_7, window_bounds = array<i64: 1, 1>}, {transform_indices = @transform_8, window_bounds = array<i64: 8, 1>}]} {
    %c0_i32 = arith.constant 0 : i32
    %0 = arith.cmpi eq, %arg1, %c0_i32 : i32
    %1 = arith.extui %0 : i1 to i32
    %c0_i32_0 = arith.constant 0 : i32
    %2 = arith.cmpi ne, %1, %c0_i32_0 : i32
    scf.if %2 {
      %cst_9 = arith.constant 0.000000e+00 : f32
      %12 = vector.broadcast %cst_9 : f32 to vector<8x192xf32>
      %c0_10 = arith.constant 0 : index
      %c0_11 = arith.constant 0 : index
      %13 = vector.load %arg11[%c0_10, %c0_11] : memref<8x192xf32, #tpu.memory_space<vmem>>, vector<8x192xf32>
      tpu.vector_store %arg11[%c0_10, %c0_11], %12 {strides = array<i32>} : memref<8x192xf32, #tpu.memory_space<vmem>>, vector<8x192xf32>,
    } else {
    }
    %c0 = arith.constant 0 : index
    %c0_1 = arith.constant 0 : index
    %3 = vector.load %arg11[%c0, %c0_1] : memref<8x192xf32, #tpu.memory_space<vmem>>, vector<8x192xf32>
    %c0_2 = arith.constant 0 : index
    %c0_3 = arith.constant 0 : index
    %c0_4 = arith.constant 0 : index
    %4 = vector.load %arg2[%c0_2, %c0_3, %c0_4] : memref<16x8x192xbf16, #tpu.memory_space<vmem>>, vector<16x8x192xbf16>
    %5 = arith.extf %4 : vector<16x8x192xbf16> to vector<16x8x192xf32>
    %cst = arith.constant dense<0.000000e+00> : vector<8x192xf32>
    %6 = vector.multi_reduction <add>, %5, %cst [0] : vector<16x8x192xf32> to vector<8x192xf32>
    %7 = arith.addf %3, %6 : vector<8x192xf32>
    %c0_5 = arith.constant 0 : index
    %c0_6 = arith.constant 0 : index
    %8 = vector.load %arg11[%c0_5, %c0_6] : memref<8x192xf32, #tpu.memory_space<vmem>>, vector<8x192xf32>
    tpu.vector_store %arg11[%c0_5, %c0_6], %7 {strides = array<i32>} : memref<8x192xf32, #tpu.memory_space<vmem>>, vector<8x192xf32>,
    %c0_i32_7 = arith.constant 0 : i32
    %9 = arith.cmpi eq, %arg1, %c0_i32_7 : i32
    %10 = arith.extui %9 : i1 to i32
    %c0_i32_8 = arith.constant 0 : i32
    %11 = arith.cmpi ne, %10, %c0_i32_8 : i32
    scf.if %11 {
      %c0_9 = arith.constant 0 : index
      %c0_10 = arith.constant 0 : index
      %12 = vector.load %arg11[%c0_9, %c0_10] : memref<8x192xf32, #tpu.memory_space<vmem>>, vector<8x192xf32>
      %cst_11 = arith.constant 6.250000e-02 : f32
      %13 = vector.broadcast %cst_11 : f32 to vector<8x192xf32>
      %14 = arith.mulf %12, %13 : vector<8x192xf32>
      %15 = arith.truncf %14 : vector<8x192xf32> to vector<8x192xbf16>
      %c0_12 = arith.constant 0 : index
      %c0_13 = arith.constant 0 : index
      %16 = vector.load %arg3[%c0_12, %c0_13] : memref<192x512xbf16, #tpu.memory_space<vmem>>, vector<192x512xbf16>
      %cst_14 = arith.constant dense<0.000000e+00> : vector<8x512xf32>
      %17 = tpu.matmul %15, %16, %cst_14 {dimension_numbers = #tpu.dot_dimension_numbers<[1], [0], [0], [1], [0, 0, 1, 1], [], []>} : vector<8x192xbf16>, vector<192x512xbf16>, vector<8x512xf32> -> vector<8x512xf32>
      %18 = arith.mulf %17, %17 : vector<8x512xf32>
      %cst_15 = arith.constant dense<0.000000e+00> : vector<8xf32>
      %19 = vector.multi_reduction <add>, %18, %cst_15 [1] : vector<8x512xf32> to vector<8xf32>
      %20 = vector.shape_cast %19 : vector<8xf32> to vector<8x1xf32>
      %cst_16 = arith.constant 1.000000e-24 : f32
      %21 = vector.broadcast %cst_16 : f32 to vector<8x1xf32>
      %22 = arith.maximumf %20, %21 : vector<8x1xf32>
      %23 = math.rsqrt %22 : vector<8x1xf32>
      %24 = vector.broadcast %23 : vector<8x1xf32> to vector<8x512xf32>
      %25 = arith.mulf %17, %24 : vector<8x512xf32>
      %c0_17 = arith.constant 0 : index
      %c0_18 = arith.constant 0 : index
      %26 = vector.load %arg4[%c0_17, %c0_18] : memref<512x32xf32, #tpu.memory_space<vmem>>, vector<512x32xf32>
      %cst_19 = arith.constant dense<0.000000e+00> : vector<8x32xf32>
      %27 = tpu.matmul %25, %26, %cst_19 {dimension_numbers = #tpu.dot_dimension_numbers<[1], [0], [0], [1], [0, 0, 1, 1], [], []>} : vector<8x512xf32>, vector<512x32xf32>, vector<8x32xf32> -> vector<8x32xf32>
      %c0_20 = arith.constant 0 : index
      %c0_21 = arith.constant 0 : index
      %28 = vector.load %arg5[%c0_20, %c0_21] : memref<1x32xf32, #tpu.memory_space<vmem>>, vector<1x32xf32>
      %29 = vector.broadcast %28 : vector<1x32xf32> to vector<8x32xf32>
      %30 = arith.addf %27, %29 : vector<8x32xf32>
      %cst_22 = arith.constant 0.000000e+00 : f32
      %31 = vector.broadcast %cst_22 : f32 to vector<8x32xf32>
      %32 = arith.maximumf %30, %31 : vector<8x32xf32>
      %c0_23 = arith.constant 0 : index
      %c0_24 = arith.constant 0 : index
      %33 = vector.load %arg6[%c0_23, %c0_24] : memref<32x32xf32, #tpu.memory_space<vmem>>, vector<32x32xf32>
      %cst_25 = arith.constant dense<0.000000e+00> : vector<8x32xf32>
      %34 = tpu.matmul %32, %33, %cst_25 {dimension_numbers = #tpu.dot_dimension_numbers<[1], [0], [0], [1], [0, 0, 1, 1], [], []>} : vector<8x32xf32>, vector<32x32xf32>, vector<8x32xf32> -> vector<8x32xf32>
      %c0_26 = arith.constant 0 : index
      %c0_27 = arith.constant 0 : index
      %35 = vector.load %arg7[%c0_26, %c0_27] : memref<1x32xf32, #tpu.memory_space<vmem>>, vector<1x32xf32>
      %36 = vector.broadcast %35 : vector<1x32xf32> to vector<8x32xf32>
      %37 = arith.addf %34, %36 : vector<8x32xf32>
      %cst_28 = arith.constant 0.000000e+00 : f32
      %38 = vector.broadcast %cst_28 : f32 to vector<8x32xf32>
      %39 = arith.maximumf %37, %38 : vector<8x32xf32>
      %c0_29 = arith.constant 0 : index
      %c0_30 = arith.constant 0 : index
      %40 = vector.load %arg8[%c0_29, %c0_30] : memref<32x1xf32, #tpu.memory_space<vmem>>, vector<32x1xf32>
      %cst_31 = arith.constant dense<0.000000e+00> : vector<8x1xf32>
      %41 = tpu.matmul %39, %40, %cst_31 {dimension_numbers = #tpu.dot_dimension_numbers<[1], [0], [0], [1], [0, 0, 1, 1], [], []>} : vector<8x32xf32>, vector<32x1xf32>, vector<8x1xf32> -> vector<8x1xf32>
      %c0_32 = arith.constant 0 : index
      %c0_33 = arith.constant 0 : index
      %42 = vector.load %arg9[%c0_32, %c0_33] : memref<1x1xf32, #tpu.memory_space<vmem>>, vector<1x1xf32>
      %43 = vector.broadcast %42 : vector<1x1xf32> to vector<8x1xf32>
      %44 = arith.addf %41, %43 : vector<8x1xf32>
      %45 = arith.negf %44 : vector<8x1xf32>
      %46 = math.exp %45 : vector<8x1xf32>
      %cst_34 = arith.constant 1.000000e+00 : f32
      %47 = vector.broadcast %cst_34 : f32 to vector<8x1xf32>
      %48 = arith.addf %47, %46 : vector<8x1xf32>
      %49 = arith.divf %47, %48 : vector<8x1xf32>
      %c0_35 = arith.constant 0 : index
      %c0_36 = arith.constant 0 : index
      %50 = vector.load %arg10[%c0_35, %c0_36] : memref<8x1xf32, #tpu.memory_space<vmem>>, vector<8x1xf32>
      tpu.vector_store %arg10[%c0_35, %c0_36], %49 {strides = array<i32>} : memref<8x1xf32, #tpu.memory_space<vmem>>, vector<8x1xf32>,
    } else {
    }
    return
  }
  func.func @transform_0(%arg0: i32, %arg1: i32) -> (i32, i32, i32) {
    %c0_i32 = arith.constant 0 : i32
    %c0_i32_0 = arith.constant 0 : i32
    return %arg1, %arg0, %c0_i32 : i32, i32, i32
  }
  func.func @transform_1(%arg0: i32, %arg1: i32) -> (i32, i32) {
    %c0_i32 = arith.constant 0 : i32
    %c0_i32_0 = arith.constant 0 : i32
    %c0_i32_1 = arith.constant 0 : i32
    return %c0_i32, %c0_i32_0 : i32, i32
  }
  func.func @transform_2(%arg0: i32, %arg1: i32) -> (i32, i32) {
    %c0_i32 = arith.constant 0 : i32
    %c0_i32_0 = arith.constant 0 : i32
    %c0_i32_1 = arith.constant 0 : i32
    return %c0_i32, %c0_i32_0 : i32, i32
  }
  func.func @transform_3(%arg0: i32, %arg1: i32) -> (i32, i32) {
    %c0_i32 = arith.constant 0 : i32
    %c0_i32_0 = arith.constant 0 : i32
    %c0_i32_1 = arith.constant 0 : i32
    return %c0_i32, %c0_i32_0 : i32, i32
  }
  func.func @transform_4(%arg0: i32, %arg1: i32) -> (i32, i32) {
    %c0_i32 = arith.constant 0 : i32
    %c0_i32_0 = arith.constant 0 : i32
    %c0_i32_1 = arith.constant 0 : i32
    return %c0_i32, %c0_i32_0 : i32, i32
  }
  func.func @transform_5(%arg0: i32, %arg1: i32) -> (i32, i32) {
    %c0_i32 = arith.constant 0 : i32
    %c0_i32_0 = arith.constant 0 : i32
    %c0_i32_1 = arith.constant 0 : i32
    return %c0_i32, %c0_i32_0 : i32, i32
  }
  func.func @transform_6(%arg0: i32, %arg1: i32) -> (i32, i32) {
    %c0_i32 = arith.constant 0 : i32
    %c0_i32_0 = arith.constant 0 : i32
    %c0_i32_1 = arith.constant 0 : i32
    return %c0_i32, %c0_i32_0 : i32, i32
  }
  func.func @transform_7(%arg0: i32, %arg1: i32) -> (i32, i32) {
    %c0_i32 = arith.constant 0 : i32
    %c0_i32_0 = arith.constant 0 : i32
    %c0_i32_1 = arith.constant 0 : i32
    return %c0_i32, %c0_i32_0 : i32, i32
  }
  func.func @transform_8(%arg0: i32, %arg1: i32) -> (i32, i32) {
    %c0_i32 = arith.constant 0 : i32
    %c0_i32_0 = arith.constant 0 : i32
    return %arg0, %c0_i32 : i32, i32
  }
}

</mosaic_0001>

<bundles_post_ra>
// kernel: clip_nsfw_forward.1
= control target key start
LH: loop header
LB: loop body
LE: loop exit
PB: predicated region body
PF: predicated region fallthrough
CT: control target
= control target key end

     0   :  { %vm37_vm0 = vcmask 523264   ;;  %vm725_vm4 = vcmask 261120   ;;  %vm800_vm8 = vcmask 7168   ;;  %s1739_s1 = inlined_call_operand.vmem [shape: bf16[192,512], index: 1, kind: input, shape index: {}]   ;;  %s1740_s0 = inlined_call_operand.vmem [shape: bf16[16,8,192], index: 0, kind: input, shape index: {}]   ;;  %s1741_s2 = inlined_call_operand.vmem [shape: f32[512,32], index: 2, kind: input, shape index: {}]   ;;  %s1742_s3 = inlined_call_operand.vmem [shape: f32[1,32], index: 3, kind: input, shape index: {}]   ;;  %s1743_s5 = inlined_call_operand.vmem [shape: f32[1,32], index: 5, kind: input, shape index: {}]   ;;  %s1744_s4 = inlined_call_operand.vmem [shape: f32[32,32], index: 4, kind: input, shape index: {}]   ;;  %s1745_s6 = inlined_call_operand.vmem [shape: f32[32,1], index: 6, kind: input, shape index: {}]   ;;  %s1746_s7 = inlined_call_operand.<no memory space> [shape: f32[1,1], index: 7, kind: input, shape index: {}]   ;;  %s1747_s8 = inlined_call_operand.vmem [shape: f32[8,1], index: 8, kind: output, shape index: {}]  }
   0x1   :  { %v920_v0 = vld [vmem:[%s1739_s1 + $0xe0] sm:$0xf]  ;;  %v1035_v1 = vld [vmem:[%s1739_s1 + $0xec] sm:$0xf0]  ;;  %v1033_v5 = vld [vmem:[%s1739_s1 + $0xe4] sm:$0xf] }
   0x2   :  { %v904_v2 = vld [vmem:[%s1739_s1 + $0xc0] sm:$0xf]  ;;  %v921_v3 = vor.u32 %v1035_v1, %v920_v0  ;;  %v1031_v4 = vld [vmem:[%s1739_s1 + $0xcc] sm:$0xf0]  ;;  %v922_v9 = vld [vmem:[%s1739_s1 + $0xf0] sm:$0xf0] }
   0x3   :  { %v905_v6 = vor.u32 %v1031_v4, %v904_v2  ;;  %v888_v7 = vld [vmem:[%s1739_s1 + $0xa0] sm:$0xf]  ;;  %v1027_v8 = vld [vmem:[%s1739_s1 + $0xac] sm:$0xf0]  ;;  %v925_v10 = vor.u32 %v1033_v5, %v922_v9  ;;  %v1029_v13 = vld [vmem:[%s1739_s1 + $0xc4] sm:$0xf] }
   0x4   :  { %440 = vmatpush.bf16.msra.mxu0 %v921_v3  ;;  %v984_v11 = vld [vmem:[%s1739_s1 + $0x160] sm:$0xf]  ;;  %v1051_v12 = vld [vmem:[%s1739_s1 + $0x16c] sm:$0xf0]  ;;  %v906_v15 = vld [vmem:[%s1739_s1 + $0xd0] sm:$0xf0]  ;;  %v889_v19 = vor.u32 %v1027_v8, %v888_v7 }
   0x5   :  { %v985_v14 = vor.u32 %v1051_v12, %v984_v11  ;;  %466 = vmatpush.bf16.msra.mxu2 %v925_v10  ;;  %v909_v16 = vor.u32 %v1029_v13, %v906_v15  ;;  %v968_v17 = vld [vmem:[%s1739_s1 + $0x140] sm:$0xf]  ;;  %v1047_v18 = vld [vmem:[%s1739_s1 + $0x14c] sm:$0xf0]  ;;  %v1025_v22 = vld [vmem:[%s1739_s1 + $0xa4] sm:$0xf] }
   0x6   :  { %v872_v20 = vld [vmem:[%s1739_s1 + $0x80] sm:$0xf]  ;;  %v969_v21 = vor.u32 %v1047_v18, %v968_v17  ;;  %v890_v23 = vld [vmem:[%s1739_s1 + $0xb0] sm:$0xf0]  ;;  %v1023_v24 = vld [vmem:[%s1739_s1 + $0x8c] sm:$0xf0] }
   0x7   :  { %457 = vmatpush.bf16.msra.mxu1 %v985_v14  ;;  %v952_v25 = vld [vmem:[%s1739_s1 + $0x120] sm:$0xf]  ;;  %v1043_v26 = vld [vmem:[%s1739_s1 + $0x12c] sm:$0xf0]  ;;  %v893_v28 = vor.u32 %v1025_v22, %v890_v23  ;;  %v1021_v29 = vld [vmem:[%s1739_s1 + $0x84] sm:$0xf]  ;;  %v873_v30 = vor.u32 %v1023_v24, %v872_v20 }
   0x8   :  { %441 = vmatpush.bf16.msra.mxu0 %v905_v6  ;;  %v856_v27 = vld [vmem:[%s1739_s1 + $0x60] sm:$0xf]  ;;  %v953_v31 = vor.u32 %v1043_v26, %v952_v25  ;;  %v874_v32 = vld [vmem:[%s1739_s1 + $0x90] sm:$0xf0]  ;;  %v1049_v33 = vld [vmem:[%s1739_s1 + $0x164] sm:$0xf] }
   0x9   :  { %467 = vmatpush.bf16.msra.mxu2 %v909_v16  ;;  %v986_v34 = vld [vmem:[%s1739_s1 + $0x170] sm:$0xf0]  ;;  %v1019_v35 = vld [vmem:[%s1739_s1 + $0x6c] sm:$0xf0]  ;;  %v936_v36 = vld [vmem:[%s1739_s1 + $0x100] sm:$0xf]  ;;  %v877_v41 = vor.u32 %v1021_v29, %v874_v32 }
   0xa   :  { %v1039_v37 = vld [vmem:[%s1739_s1 + $0x10c] sm:$0xf0]  ;;  %v989_v38 = vor.u32 %v1049_v33, %v986_v34  ;;  %v928_v39 = vld [vmem:[%s1739_s1 + $0xe8] sm:$0xf]  ;;  %v1036_v40 = vld [vmem:[%s1739_s1 + $0xf4] sm:$0xf0]  ;;  %v857_v44 = vor.u32 %v1019_v35, %v856_v27 }
   0xb   :  { %458 = vmatpush.bf16.msra.mxu1 %v969_v21  ;;  %v1045_v42 = vld [vmem:[%s1739_s1 + $0x144] sm:$0xf]  ;;  %v970_v43 = vld [vmem:[%s1739_s1 + $0x150] sm:$0xf0]  ;;  %v937_v45 = vor.u32 %v1039_v37, %v936_v36  ;;  %v840_v49 = vld [vmem:[%s1739_s1 + $0x40] sm:$0xf]  ;;  %v929_v51 = vor.u32 %v1036_v40, %v928_v39 }
   0xc   :  { %442 = vmatpush.bf16.msra.mxu0 %v889_v19  ;;  %483 = vmatpush.bf16.msra.mxu3 %v989_v38  ;;  %v1017_v46 = vld [vmem:[%s1739_s1 + $0x64] sm:$0xf]  ;;  %v858_v47 = vld [vmem:[%s1739_s1 + $0x70] sm:$0xf0]  ;;  %v973_v48 = vor.u32 %v1045_v42, %v970_v43  ;;  %v1015_v50 = vld [vmem:[%s1739_s1 + $0x4c] sm:$0xf0] }
   0xd   :  { %468 = vmatpush.bf16.msra.mxu2 %v893_v28  ;;  %v1041_v52 = vld [vmem:[%s1739_s1 + $0x124] sm:$0xf]  ;;  %v912_v53 = vld [vmem:[%s1739_s1 + $0xc8] sm:$0xf]  ;;  %v1032_v54 = vld [vmem:[%s1739_s1 + $0xd4] sm:$0xf0]  ;;  %v861_v56 = vor.u32 %v1017_v46, %v858_v47  ;;  %v841_v59 = vor.u32 %v1015_v50, %v840_v49 }
   0xe   :  { %v954_v55 = vld [vmem:[%s1739_s1 + $0x130] sm:$0xf0]  ;;  %v1013_v57 = vld [vmem:[%s1739_s1 + $0x44] sm:$0xf]  ;;  %v824_v63 = vld [vmem:[%s1739_s1 + $0x20] sm:$0xf]  ;;  %v913_v1 = vor.u32 %v1032_v54, %v912_v53 }
   0xf   :  { %459 = vmatpush.bf16.msra.mxu1 %v953_v31  ;;  %v957_v58 = vor.u32 %v1041_v52, %v954_v55  ;;  %v842_v60 = vld [vmem:[%s1739_s1 + $0x50] sm:$0xf0]  ;;  %v1037_v61 = vld [vmem:[%s1739_s1 + $0x104] sm:$0xf]  ;;  %v1011_v0 = vld [vmem:[%s1739_s1 + $0x2c] sm:$0xf0] }
  0x10   :  { %443 = vmatpush.bf16.msra.mxu0 %v873_v30  ;;  %484 = vmatpush.bf16.msra.mxu3 %v973_v48  ;;  %v938_v62 = vld [vmem:[%s1739_s1 + $0x110] sm:$0xf0]  ;;  %v896_v2 = vld [vmem:[%s1739_s1 + $0xa8] sm:$0xf]  ;;  %v1028_v3 = vld [vmem:[%s1739_s1 + $0xb4] sm:$0xf0]  ;;  %v845_v6 = vor.u32 %v1013_v57, %v842_v60  ;;  %v825_v10 = vor.u32 %v1011_v0, %v824_v63 }
  0x11   :  { %469 = vmatpush.bf16.msra.mxu2 %v877_v41  ;;  %v1063_v4 = vmov 0.0   ;;  %v808_v5 = vld [vmem:[%s1739_s1] sm:$0xf]  ;;  %v1009_v7 = vld [vmem:[%s1739_s1 + $0x24] sm:$0xf]  ;;  %v941_v9 = vor.u32 %v1037_v61, %v938_v62  ;;  %v42_v13 = vld [vmem:[%s1740_s0 + $0x8] sm:$0xff]  ;;  %v897_v16 = vor.u32 %v1028_v3, %v896_v2 }
  0x12   :  { %38 = vst.msk [vmem:[#allocation2 + $0x8] sm:$0xff] %vm37_vm0, %v1063_v4  ;;  %v826_v8 = vld [vmem:[%s1739_s1 + $0x30] sm:$0xf0]  ;;  %v1007_v11 = vld [vmem:[%s1739_s1 + $0xc] sm:$0xf0]  ;;  %v41_v12 = vld [vmem:[%s1740_s0] sm:$0xff]  ;;  %v59_v26 = vunpack.c.l.bf16 %v42_v13  ;;  %v60_v27 = vunpack.c.h.bf16 %v42_v13 }
  0x13   :  { %460 = vmatpush.bf16.msra.mxu1 %v937_v45  ;;  %v1034_v14 = vld [vmem:[%s1739_s1 + $0xec] sm:$0xf]  ;;  %v930_v15 = vld [vmem:[%s1739_s1 + $0xf8] sm:$0xf0]  ;;  %v43_v17 = vld [vmem:[%s1740_s0 + $0x10] sm:$0xff]  ;;  %v829_v18 = vor.u32 %v1009_v7, %v826_v8  ;;  %v57_v24 = vunpack.c.l.bf16 %v41_v12  ;;  %v58_v25 = vunpack.c.h.bf16 %v41_v12  ;;  %v809_v28 = vor.u32 %v1007_v11, %v808_v5 }
  0x14   :  { %444 = vmatpush.bf16.msra.mxu0 %v857_v44  ;;  %485 = vmatpush.bf16.msra.mxu3 %v957_v58  ;;  %v880_v19 = vld [vmem:[%s1739_s1 + $0x88] sm:$0xf]  ;;  %v1024_v20 = vld [vmem:[%s1739_s1 + $0x94] sm:$0xf0]  ;;  %v1005_v22 = vld [vmem:[%s1739_s1 + $0x4] sm:$0xf]  ;;  %v62_v30 = vunpack.c.h.bf16 %v43_v17  ;;  %v933_v31 = vor.u32 %v1034_v14, %v930_v15  ;;  %v61_v35 = vunpack.c.l.bf16 %v43_v17 }
  0x15   :  { %470 = vmatpush.bf16.msra.mxu2 %v861_v56  ;;  %v44_v21 = vld [vmem:[%s1740_s0 + $0x18] sm:$0xff]  ;;  %v810_v23 = vld [vmem:[%s1739_s1 + $0x10] sm:$0xf0]  ;;  %v45_v29 = vld [vmem:[%s1740_s0 + $0x20] sm:$0xff]  ;;  %v881_v34 = vor.u32 %v1024_v20, %v880_v19  ;;  %v89_v43 = vadd.f32 %v59_v26, %v57_v24  ;;  %v105_v44 = vsel %vm37_vm0, %v58_v25, 0.0  ;;  %v106_v45 = vsel %vm37_vm0, %v60_v27, 0.0 }
  0x16   :  { %v1030_v32 = vld [vmem:[%s1739_s1 + $0xcc] sm:$0xf]  ;;  %v914_v33 = vld [vmem:[%s1739_s1 + $0xd8] sm:$0xf0]  ;;  %v64_v36 = vunpack.c.h.bf16 %v44_v21  ;;  %v813_v37 = vor.u32 %v1005_v22, %v810_v23  ;;  %v63_v39 = vunpack.c.l.bf16 %v44_v21  ;;  %v66_v42 = vunpack.c.h.bf16 %v45_v29  ;;  %v47_v47 = vld [vmem:[%s1740_s0 + $0x30] sm:$0xff] }
  0x17   :  { %492 = vmatpush.bf16.msrb.mxu1 %v929_v51  ;;  %v46_v38 = vld [vmem:[%s1740_s0 + $0x28] sm:$0xff]  ;;  %v898_v41 = vld [vmem:[%s1739_s1 + $0xb8] sm:$0xf0]  ;;  %v917_v46 = vor.u32 %v1030_v32, %v914_v33  ;;  %v107_v48 = vadd.f32 %v106_v45, %v105_v44  ;;  %v108_v49 = vsel %vm37_vm0, %v62_v30, 0.0  ;;  %v1326_v51 = vld [vmem:[%s1740_s0 + $0x40] sm:$0xff]  ;;  %v65_v53 = vunpack.c.l.bf16 %v45_v29 }
  0x18   :  { %445 = vmatpush.bf16.msra.mxu0 %v841_v59  ;;  %486 = vmatpush.bf16.msra.mxu3 %v941_v9  ;;  %v1026_v40 = vld [vmem:[%s1739_s1 + $0xac] sm:$0xf]  ;;  %v48_v50 = vld [vmem:[%s1740_s0 + $0x38] sm:$0xff]  ;;  %v68_v54 = vunpack.c.h.bf16 %v46_v38  ;;  %v90_v55 = vadd.f32 %v89_v43, %v61_v35  ;;  %v110_v56 = vsel %vm37_vm0, %v64_v36, 0.0  ;;  %v1337_v58 = vld [vmem:[%s1740_s0 + $0x50] sm:$0xff]  ;;  %v67_v59 = vunpack.c.l.bf16 %v46_v38 }
  0x19   :  { %471 = vmatpush.bf16.msra.mxu2 %v845_v6  ;;  %v1331_v52 = vld [vmem:[%s1740_s0 + $0x48] sm:$0xff]  ;;  %v901_v57 = vor.u32 %v1026_v40, %v898_v41  ;;  %v109_v60 = vadd.f32 %v108_v49, %v107_v48  ;;  %v69_v62 = vunpack.c.l.bf16 %v47_v47  ;;  %v70_v63 = vunpack.c.h.bf16 %v47_v47  ;;  %v882_v2 = vld [vmem:[%s1739_s1 + $0x98] sm:$0xf0]  ;;  %v1376_v29 = vld [vmem:[%s1740_s0 + $0x60] sm:$0xff] }
  0x1a   :  { %v1022_v61 = vld [vmem:[%s1739_s1 + $0x8c] sm:$0xf]  ;;  %v91_v0 = vadd.f32 %v90_v55, %v63_v39  ;;  %v72_v3 = vunpack.c.h.bf16 %v48_v50  ;;  %v74_v4 = vunpack.c.h.bf16 %v1326_v51  ;;  %v76_v5 = vunpack.c.h.bf16 %v1331_v52  ;;  %v994_v8 = vld [vmem:[%s1739_s1 + $0x178] sm:$0xf0]  ;;  %v1052_v32 = vld [vmem:[%s1739_s1 + $0x174] sm:$0xf0] }
  0x1b   :  { %493 = vmatpush.bf16.msrb.mxu1 %v913_v1  ;;  %v112_v1 = vsel %vm37_vm0, %v66_v42, 0.0  ;;  %v111_v6 = vadd.f32 %v110_v56, %v109_v60  ;;  %v1050_v7 = vld [vmem:[%s1739_s1 + $0x16c] sm:$0xf]  ;;  %v78_v9 = vunpack.c.h.bf16 %v1337_v58  ;;  %v114_v11 = vsel %vm37_vm0, %v68_v54, 0.0  ;;  %v978_v23 = vld [vmem:[%s1739_s1 + $0x158] sm:$0xf0] }
  0x1c   :  { %446 = vmatpush.bf16.msra.mxu0 %v825_v10  ;;  %v92_v10 = vadd.f32 %v91_v0, %v65_v53  ;;  %v997_v12 = vor.u32 %v1050_v7, %v994_v8  ;;  %v885_v14 = vor.u32 %v1022_v61, %v882_v2  ;;  %v71_v15 = vunpack.c.l.bf16 %v48_v50  ;;  %v1046_v22 = vld [vmem:[%s1739_s1 + $0x14c] sm:$0xf]  ;;  %v1369_v24 = vld [vmem:[%s1740_s0 + $0x58] sm:$0xff]  ;;  %v864_v33 = vld [vmem:[%s1739_s1 + $0x68] sm:$0xf] }
  0x1d   :  { %472 = vmatpush.bf16.msra.mxu2 %v829_v18  ;;  %v113_v13 = vadd.f32 %v112_v1, %v111_v6  ;;  %v116_v17 = vsel %vm37_vm0, %v70_v63, 0.0  ;;  %v73_v18 = vunpack.c.l.bf16 %v1326_v51  ;;  %v118_v20 = vsel %vm37_vm0, %v72_v3, 0.0  ;;  %v1018_v38 = vld [vmem:[%s1739_s1 + $0x6c] sm:$0xf]  ;;  %v866_v39 = vld [vmem:[%s1739_s1 + $0x78] sm:$0xf0] }
  0x1e   :  { %v120_v21 = vsel %vm37_vm0, %v74_v4, 0.0  ;;  %v122_v26 = vsel %vm37_vm0, %v76_v5, 0.0  ;;  %v124_v27 = vsel %vm37_vm0, %v78_v9, 0.0  ;;  %v1400_v40 = vld [vmem:[%s1740_s0 + $0x68] sm:$0xff]  ;;  %v80_v41 = vunpack.c.h.bf16 %v1369_v24  ;;  %v1048_v45 = vld [vmem:[%s1739_s1 + $0x154] sm:$0xf0] }
  0x1f   :  { %494 = vmatpush.bf16.msrb.mxu1 %v897_v16  ;;  %v93_v16 = vadd.f32 %v92_v10, %v67_v59  ;;  %v115_v19 = vadd.f32 %v114_v11, %v113_v13  ;;  %v976_v44 = vld [vmem:[%s1739_s1 + $0x148] sm:$0xf]  ;;  %v77_v47 = vunpack.c.l.bf16 %v1337_v58  ;;  %v869_v49 = vor.u32 %v1018_v38, %v866_v39  ;;  %v1016_v51 = vld [vmem:[%s1739_s1 + $0x54] sm:$0xf0]  ;;  %v850_v53 = vld [vmem:[%s1739_s1 + $0x58] sm:$0xf0] }
  0x20   :  { %447 = vmatpush.bf16.msra.mxu0 %v809_v28  ;;  %v981_v28 = vor.u32 %v1046_v22, %v978_v23  ;;  %v977_v50 = vor.u32 %v1048_v45, %v976_v44  ;;  %v960_v56 = vld [vmem:[%s1739_s1 + $0x128] sm:$0xf]  ;;  %v1042_v58 = vld [vmem:[%s1739_s1 + $0x12c] sm:$0xf]  ;;  %v79_v59 = vunpack.c.l.bf16 %v1369_v24  ;;  %v82_v60 = vunpack.c.h.bf16 %v1376_v29  ;;  %v1012_v0 = vld [vmem:[%s1739_s1 + $0x34] sm:$0xf0] }
  0x21   :  { %473 = vmatpush.bf16.msra.mxu2 %v813_v37  ;;  %v94_v25 = vadd.f32 %v93_v16, %v69_v62  ;;  %v117_v30 = vadd.f32 %v116_v17, %v115_v19  ;;  %v1020_v37 = vld [vmem:[%s1739_s1 + $0x74] sm:$0xf0]  ;;  %v962_v62 = vld [vmem:[%s1739_s1 + $0x138] sm:$0xf0]  ;;  %v832_v63 = vld [vmem:[%s1739_s1 + $0x28] sm:$0xf]  ;;  %v81_v3 = vunpack.c.l.bf16 %v1376_v29  ;;  %v84_v7 = vunpack.c.h.bf16 %v1400_v40 }
  0x22   :  { %v865_v43 = vor.u32 %v1020_v37, %v864_v33  ;;  %v55_v1 = vld [vmem:[%s1740_s0 + $0x70] sm:$0xff]  ;;  %v56_v2 = vld [vmem:[%s1740_s0 + $0x78] sm:$0xff]  ;;  %v126_v5 = vsel %vm37_vm0, %v80_v41, 0.0  ;;  %v965_v6 = vor.u32 %v1042_v58, %v962_v62  ;;  %v1010_v11 = vld [vmem:[%s1739_s1 + $0x2c] sm:$0xf]  ;;  %v128_v23 = vsel %vm37_vm0, %v82_v60, 0.0 }
  0x23   :  { %495 = vmatpush.bf16.msrb.mxu1 %v881_v34  ;;  %v75_v34 = vunpack.c.l.bf16 %v1331_v52  ;;  %v95_v35 = vadd.f32 %v94_v25, %v71_v15  ;;  %v119_v42 = vadd.f32 %v118_v20, %v117_v30  ;;  %v1014_v52 = vld [vmem:[%s1739_s1 + $0x4c] sm:$0xf]  ;;  %v946_v13 = vld [vmem:[%s1739_s1 + $0x118] sm:$0xf0]  ;;  %v833_v15 = vor.u32 %v1012_v0, %v832_v63  ;;  %v944_v17 = vld [vmem:[%s1739_s1 + $0x108] sm:$0xf] }
  0x24   :  { %518 = vmatpush.bf16.msrb.mxu0 %v933_v31  ;;  %v992_v31 = vld [vmem:[%s1739_s1 + $0x168] sm:$0xf]  ;;  %v853_v9 = vor.u32 %v1014_v52, %v850_v53  ;;  %v834_v16 = vld [vmem:[%s1739_s1 + $0x38] sm:$0xf0]  ;;  %v83_v20 = vunpack.c.l.bf16 %v1400_v40  ;;  %v1008_v25 = vld [vmem:[%s1739_s1 + $0x14] sm:$0xf0]  ;;  %v87_v37 = vunpack.c.l.bf16 %v56_v2 }
  0x25   :  { %535 = vmatpush.bf16.msrb.mxu2 %v997_v12  ;;  %v993_v36 = vor.u32 %v1052_v32, %v992_v31  ;;  %v96_v48 = vadd.f32 %v95_v35, %v73_v18  ;;  %v121_v54 = vadd.f32 %v120_v21, %v119_v42  ;;  %v1038_v12 = vld [vmem:[%s1739_s1 + $0x10c] sm:$0xf]  ;;  %v1040_v18 = vld [vmem:[%s1739_s1 + $0x114] sm:$0xf0]  ;;  %v86_v21 = vunpack.c.h.bf16 %v55_v1  ;;  %v816_v24 = vld [vmem:[%s1739_s1 + $0x8] sm:$0xf] }
  0x26   :  { %v949_v19 = vor.u32 %v1038_v12, %v946_v13  ;;  %v130_v30 = vsel %vm37_vm0, %v84_v7, 0.0  ;;  %v837_v31 = vor.u32 %v1010_v11, %v834_v16  ;;  %v945_v32 = vor.u32 %v1040_v18, %v944_v17  ;;  %v1006_v35 = vld [vmem:[%s1739_s1 + $0xc] sm:$0xf]  ;;  %v599_v58 = vld [vmem:[%s1741_s2 + $0xf8] sm:$0xff]  ;;  %v582_v62 = vld [vmem:[%s1741_s2 + $0x70] sm:$0xff] }
  0x27   :  { %509 = vmatpush.bf16.msrb.mxu3 %v993_v36  ;;  %496 = vmatpush.bf16.msrb.mxu1 %v865_v43  ;;  %v97_v61 = vadd.f32 %v96_v48, %v75_v34  ;;  %v123_v4 = vadd.f32 %v122_v26, %v121_v54  ;;  %v85_v26 = vunpack.c.l.bf16 %v55_v1  ;;  %v817_v34 = vor.u32 %v1008_v25, %v816_v24  ;;  %v818_v36 = vld [vmem:[%s1739_s1 + $0x18] sm:$0xf0]  ;;  %v598_v63 = vld [vmem:[%s1741_s2 + $0xf0] sm:$0xff]  ;;  %v596_v7 = vld [vmem:[%s1741_s2 + $0xe0] sm:$0xff] }
  0x28   :  { %519 = vmatpush.bf16.msrb.mxu0 %v917_v46  ;;  %v848_v46 = vld [vmem:[%s1739_s1 + $0x48] sm:$0xf]  ;;  %v132_v39 = vsel %vm37_vm0, %v86_v21, 0.0  ;;  %v821_v43 = vor.u32 %v1006_v35, %v818_v36  ;;  %v614_v0 = vld [vmem:[%s1741_s2 + $0x170] sm:$0xff]  ;;  %v611_v35 = vld [vmem:[%s1741_s2 + $0x158] sm:$0xff] }
  0x29   :  { %536 = vmatpush.bf16.msrb.mxu2 %v981_v28  ;;  %v849_v55 = vor.u32 %v1016_v51, %v848_v46  ;;  %v98_v8 = vadd.f32 %v97_v61, %v77_v47  ;;  %v40_v46 = vld [vmem:[#allocation2 + $0x8] sm:$0xff]  ;;  %v631_v61 = vld [vmem:[%s1741_s2 + $0x1f8] sm:$0xff]  ;;  %v630_v1 = vld [vmem:[%s1741_s2 + $0x1f0] sm:$0xff] }
  0x2a   :  { %v627_v36 = vld [vmem:[%s1741_s2 + $0x1d8] sm:$0xff] }
  0x2b   :  { %510 = vmatpush.bf16.msrb.mxu3 %v977_v50  ;;  %497 = vmatpush.bf16.msrb.mxu1 %v849_v55  ;;  %v99_v22 = vadd.f32 %v98_v8, %v79_v59  ;;  %v615_v59 = vld [vmem:[%s1741_s2 + $0x178] sm:$0xff]  ;;  %v612_v8 = vld [vmem:[%s1741_s2 + $0x160] sm:$0xff] }
  0x2c   :  { %520 = vmatpush.bf16.msrb.mxu0 %v901_v57  ;;  %v1044_v57 = vld [vmem:[%s1739_s1 + $0x134] sm:$0xf0] }
  0x2d   :  { %v961_v10 = vor.u32 %v1044_v57, %v960_v56  ;;  %537 = vmatpush.bf16.msrb.mxu2 %v965_v6  ;;  %v100_v29 = vadd.f32 %v99_v22, %v81_v3  ;;  %v583_v57 = vld [vmem:[%s1741_s2 + $0x78] sm:$0xff]  ;;  %v597_v3 = vld [vmem:[%s1741_s2 + $0xe8] sm:$0xff]  ;;  %v580_v6 = vld [vmem:[%s1741_s2 + $0x60] sm:$0xff] }
  0x2f   :  { %511 = vmatpush.bf16.msrb.mxu3 %v961_v10  ;;  %498 = vmatpush.bf16.msrb.mxu1 %v833_v15  ;;  %v101_v38 = vadd.f32 %v100_v29, %v83_v20 }
  0x30   :  { %521 = vmatpush.bf16.msrb.mxu0 %v885_v14  ;;  %v125_v14 = vadd.f32 %v124_v27, %v123_v4  ;;  %v88_v27 = vunpack.c.h.bf16 %v56_v2  ;;  %v581_v2 = vld [vmem:[%s1741_s2 + $0x68] sm:$0xff] }
  0x31   :  { %538 = vmatpush.bf16.msrb.mxu2 %v949_v19  ;;  %v102_v41 = vadd.f32 %v101_v38, %v85_v26  ;;  %v613_v4 = vld [vmem:[%s1741_s2 + $0x168] sm:$0xff]  ;;  %v594_v38 = vld [vmem:[%s1741_s2 + $0xd0] sm:$0xff] }
  0x32   :  { %v127_v28 = vadd.f32 %v126_v5, %v125_v14  ;;  %v134_v42 = vsel %vm37_vm0, %v88_v27, 0.0  ;;  %v629_v5 = vld [vmem:[%s1741_s2 + $0x1e8] sm:$0xff] }
  0x33   :  { %512 = vmatpush.bf16.msrb.mxu3 %v945_v32  ;;  %499 = vmatpush.bf16.msrb.mxu1 %v817_v34  ;;  %v103_v45 = vadd.f32 %v102_v41, %v87_v37  ;;  %v595_v34 = vld [vmem:[%s1741_s2 + $0xd8] sm:$0xff]  ;;  %v578_v37 = vld [vmem:[%s1741_s2 + $0x50] sm:$0xff]  ;;  %v577_v41 = vld [vmem:[%s1741_s2 + $0x48] sm:$0xff] }
  0x34   :  { %522 = vmatpush.bf16.msrb.mxu0 %v869_v49  ;;  %v129_v33 = vadd.f32 %v128_v23, %v127_v28 }
  0x35   :  { %v145_v49 = vmul.f32 0.0625, %v103_v45  ;;  %v576_v45 = vld [vmem:[%s1741_s2 + $0x40] sm:$0xff] }
  0x36   :  { %v131_v40 = vadd.f32 %v130_v30, %v129_v33  ;;  %v579_v33 = vld [vmem:[%s1741_s2 + $0x58] sm:$0xff] }
  0x37   :  { %v147_v50 = vpack.c.bf16 %v145_v49, %v145_v49  ;;  %v575_v49 = vld [vmem:[%s1741_s2 + $0x38] sm:$0xff] }
  0x38   :  { %523 = vmatpush.bf16.msrb.mxu0 %v853_v9  ;;  %v133_v44 = vadd.f32 %v132_v39, %v131_v40  ;;  %v628_v9 = vld [vmem:[%s1741_s2 + $0x1e0] sm:$0xff]  ;;  %v610_v39 = vld [vmem:[%s1741_s2 + $0x150] sm:$0xff] }
  0x39   :  { %474 = vmatmul.bf16.vlgmr.msra.gmra.mxu2 %v147_v50  ;;  %448 = vmatmul.bf16.vlgmr.msra.gmra.mxu0 %v147_v50  ;;  %v626_v40 = vld [vmem:[%s1741_s2 + $0x1d0] sm:$0xff] }
  0x3a   :  { %v135_v47 = vadd.f32 %v134_v42, %v133_v44  ;;  %676 = vmatpush.msra.mxu2 %v615_v59  ;;  %v593_v42 = vld [vmem:[%s1741_s2 + $0xc8] sm:$0xff] }
  0x3b   :  { %v625_v44 = vld [vmem:[%s1741_s2 + $0x1c8] sm:$0xff] }
  0x3c   :  { %524 = vmatpush.bf16.msrb.mxu0 %v837_v31  ;;  %v137_v48 = vadd.f32 %v135_v47, %v40_v46  ;;  %677 = vmatpush.msra.mxu2 %v614_v0  ;;  %v592_v46 = vld [vmem:[%s1741_s2 + $0xc0] sm:$0xff]  ;;  %v605_v59 = vld [vmem:[%s1741_s2 + $0x128] sm:$0xff] }
  0x3d   :  { %v608_v47 = vld [vmem:[%s1741_s2 + $0x140] sm:$0xff] }
  0x3e   :  { %139 = vst.msk [vmem:[#allocation2 + $0x8] sm:$0xff] %vm37_vm0, %v137_v48  ;;  %678 = vmatpush.msra.mxu2 %v613_v4  ;;  %v624_v48 = vld [vmem:[%s1741_s2 + $0x1c0] sm:$0xff]  ;;  %v619_v4 = vld [vmem:[%s1741_s2 + $0x198] sm:$0xff] }
  0x3f   :  { %v620_v0 = vld [vmem:[%s1741_s2 + $0x1a0] sm:$0xff] }
  0x40   :  { %525 = vmatpush.bf16.msrb.mxu0 %v821_v43  ;;  %679 = vmatpush.msra.mxu2 %v612_v8  ;;  %v609_v43 = vld [vmem:[%s1741_s2 + $0x148] sm:$0xff]  ;;  %v618_v8 = vld [vmem:[%s1741_s2 + $0x190] sm:$0xff] }
  0x42   :  { %680 = vmatpush.msra.mxu2 %v611_v35  ;;  %v719_v35 = vld [vmem:[%s1744_s4 + $0x10] sm:$0xff] }
  0x44   :  { %696 = vmatpush.msra.mxu0 %v631_v61  ;;  %681 = vmatpush.msra.mxu2 %v610_v39  ;;  %v572_v61 = vld [vmem:[%s1741_s2 + $0x20] sm:$0xff] }
  0x45   :  { %v144_v51 = vld [vmem:[#allocation2 + $0x8] sm:$0xff] }
  0x46   :  { %v146_v52 = vmul.f32 0.0625, %v144_v51  ;;  %697 = vmatpush.msra.mxu0 %v630_v1  ;;  %682 = vmatpush.msra.mxu2 %v609_v43  ;;  %v607_v51 = vld [vmem:[%s1741_s2 + $0x138] sm:$0xff] }
  0x47   :  { %v571_v1 = vld [vmem:[%s1741_s2 + $0x18] sm:$0xff] }
  0x48   :  { %v148_v53 = vpack.c.bf16 %v146_v52, %v146_v52  ;;  %698 = vmatpush.msra.mxu0 %v629_v5  ;;  %683 = vmatpush.msra.mxu2 %v608_v47  ;;  %v623_v52 = vld [vmem:[%s1741_s2 + $0x1b8] sm:$0xff]  ;;  %v570_v5 = vld [vmem:[%s1741_s2 + $0x10] sm:$0xff]  ;;  %v750_v47 = vld [vmem:[%s1745_s6] sm:$0xff] }
  0x49   :  { %526 = vmatmul.bf16.vlgmr.msrb.gmra.mxu0 %v147_v50 }
  0x4a   :  { %998 = vmatmul.msk.bf16.vlgmr.msra.gmra.mxu1 %vm37_vm0, %v148_v53  ;;  %999 = vmatmul.msk.bf16.vlgmr.msra.gmra.mxu3 %vm37_vm0, %v148_v53 }
  0x4b   :  { %1001 = vmatmul.msk.bf16.vlgmr.msrb.gmra.mxu2 %vm37_vm0, %v148_v53  ;;  %636 = vmatpush.msra.mxu3 %v583_v57  ;;  %v573_v57 = vld [vmem:[%s1741_s2 + $0x28] sm:$0xff] }
  0x4c   :  { %656 = vmatpush.msra.mxu1 %v599_v58  ;;  %699 = vmatpush.msra.mxu0 %v628_v9  ;;  %v589_v58 = vld [vmem:[%s1741_s2 + $0xa8] sm:$0xff] }
  0x4d   :  { %637 = vmatpush.msra.mxu3 %v582_v62  ;;  %684 = vmatpush.msra.mxu2 %v607_v51  ;;  %v588_v62 = vld [vmem:[%s1741_s2 + $0xa0] sm:$0xff]  ;;  %v569_v9 = vld [vmem:[%s1741_s2 + $0x8] sm:$0xff] }
  0x4e   :  { %657 = vmatpush.msra.mxu1 %v598_v63  ;;  %700 = vmatpush.msra.mxu0 %v627_v36  ;;  %v604_v63 = vld [vmem:[%s1741_s2 + $0x120] sm:$0xff] }
  0x4f   :  { %638 = vmatpush.msra.mxu3 %v581_v2  ;;  %v587_v2 = vld [vmem:[%s1741_s2 + $0x98] sm:$0xff]  ;;  %v1054_v36 = vld [vmem:[%s1742_s3] ss:$0 sm:$0xff] }
  0x50   :  { %658 = vmatpush.msra.mxu1 %v597_v3  ;;  %701 = vmatpush.msra.mxu0 %v626_v40  ;;  %v603_v3 = vld [vmem:[%s1741_s2 + $0x118] sm:$0xff] }
  0x51   :  { %639 = vmatpush.msra.mxu3 %v580_v6  ;;  %v586_v6 = vld [vmem:[%s1741_s2 + $0x90] sm:$0xff] }
  0x52   :  { %659 = vmatpush.msra.mxu1 %v596_v7  ;;  %702 = vmatpush.msra.mxu0 %v625_v44  ;;  %v602_v7 = vld [vmem:[%s1741_s2 + $0x110] sm:$0xff] }
  0x53   :  { %640 = vmatpush.msra.mxu3 %v579_v33 }
  0x54   :  { %660 = vmatpush.msra.mxu1 %v595_v34  ;;  %703 = vmatpush.msra.mxu0 %v624_v48  ;;  %v720_v34 = vld [vmem:[%s1744_s4 + $0x18] sm:$0xff]  ;;  %v13_v48 = vstv %s1746_s7 }
  0x55   :  { %641 = vmatpush.msra.mxu3 %v578_v37  ;;  %14 = vst [vmem:[#allocation3] sm:$0x1] %v13_v48 }
  0x56   :  { %661 = vmatpush.msra.mxu1 %v594_v38  ;;  %704 = vmatpush.msra.mxu0 %v623_v52 }
  0x57   :  { %642 = vmatpush.msra.mxu3 %v577_v41 }
  0x58   :  { %662 = vmatpush.msra.mxu1 %v593_v42 }
  0x59   :  { %643 = vmatpush.msra.mxu3 %v576_v45 }
  0x5a   :  { %500 = vmatmul.bf16.vlgmr.msrb.gmra.mxu1 %v147_v50  ;;  %1000 = vmatmul.msk.bf16.vlgmr.msrb.gmra.mxu3 %vm37_vm0, %v148_v53  ;;  %v591_v50 = vld [vmem:[%s1741_s2 + $0xb8] sm:$0xff]  ;;  %v574_v53 = vld [vmem:[%s1741_s2 + $0x30] sm:$0xff] }
  0x5b   :  { %663 = vmatpush.msra.mxu1 %v592_v46  ;;  %644 = vmatpush.msra.mxu3 %v575_v49  ;;  %v751_v46 = vld [vmem:[%s1745_s6 + $0x8] sm:$0xff]  ;;  %v1055_v49 = vld [vmem:[%s1743_s5] ss:$0 sm:$0xff] }
  0x5d   :  { %664 = vmatpush.msra.mxu1 %v591_v50  ;;  %645 = vmatpush.msra.mxu3 %v574_v53  ;;  %v1056_v53 = vld [vmem:[#allocation3] ss:$0 sm:$0xff] }
  0x5f   :  { %646 = vmatpush.msra.mxu3 %v573_v57 }
  0x61   :  { %647 = vmatpush.msra.mxu3 %v572_v61 }
  0x63   :  { %648 = vmatpush.msra.mxu3 %v571_v1 }
  0x65   :  { %649 = vmatpush.msra.mxu3 %v570_v5 }
  0x67   :  { %650 = vmatpush.msra.mxu3 %v569_v9 }
  0xb6   :  { %v449_v54 = vpop.f32.mrf.mxu0 }
  0xbc   :  { %v475_v55 = vpop.f32.mrf.mxu2 }
  0xbe   :  { %v451_v56 = vpop.f32.mrf.mxu0 }
  0xbf   :  { %v622_v56 = vld [vmem:[%s1741_s2 + $0x1b0] sm:$0xff] }
  0xc0   :  { %705 = vmatpush.msra.mxu0 %v622_v56 }
  0xc4   :  { %v477_v10 = vpop.f32.mrf.mxu2 }
  0xc5   :  { %v585_v10 = vld [vmem:[%s1741_s2 + $0x88] sm:$0xff] }
  0xc6   :  { %v527_v12 = vpop.f32.mrf.mxu0 }
  0xc7   :  { %v462_v60 = vpop.f32.mrf.mxu1 }
  0xc8   :  { %v1539_v18 = vadd.f32 %v462_v60, %v449_v54  ;;  %v590_v54 = vld [vmem:[%s1741_s2 + $0xb0] sm:$0xff]  ;;  %v621_v60 = vld [vmem:[%s1741_s2 + $0x1a8] sm:$0xff] }
  0xc9   :  { %665 = vmatpush.msra.mxu1 %v590_v54  ;;  %706 = vmatpush.msra.mxu0 %v621_v60 }
  0xca   :  { %v544_v20 = vmul.f32 %v1539_v18, %v1539_v18 }
  0xcb   :  { %666 = vmatpush.msra.mxu1 %v589_v58  ;;  %707 = vmatpush.msra.mxu0 %v620_v0 }
  0xcd   :  { %v488_v11 = vpop.f32.mrf.mxu3  ;;  %667 = vmatpush.msra.mxu1 %v588_v62  ;;  %708 = vmatpush.msra.mxu0 %v619_v4 }
  0xce   :  { %v540_v14 = vpop.f32.mrf.mxu2  ;;  %v529_v16 = vpop.f32.mrf.mxu0  ;;  %v1541_v19 = vadd.f32 %v488_v11, %v475_v55  ;;  %v606_v55 = vld [vmem:[%s1741_s2 + $0x130] sm:$0xff]  ;;  %v601_v11 = vld [vmem:[%s1741_s2 + $0x108] sm:$0xff] }
  0xcf   :  { %v464_v13 = vpop.f32.mrf.mxu1  ;;  %v1547_v22 = vadd.f32 %v540_v14, %v527_v12  ;;  %685 = vmatpush.msra.mxu2 %v606_v55  ;;  %668 = vmatpush.msra.mxu1 %v587_v2  ;;  %v617_v12 = vld [vmem:[%s1741_s2 + $0x188] sm:$0xff]  ;;  %v584_v14 = vld [vmem:[%s1741_s2 + $0x80] sm:$0xff] }
  0xd0   :  { %v545_v21 = vmul.f32 %v1541_v19, %v1541_v19  ;;  %709 = vmatpush.msra.mxu0 %v618_v8  ;;  %v568_v13 = vld [vmem:[%s1741_s2] sm:$0xff] }
  0xd1   :  { %v547_v28 = vmul.f32 %v1547_v22, %v1547_v22  ;;  %686 = vmatpush.msra.mxu2 %v605_v59  ;;  %669 = vmatpush.msra.mxu1 %v586_v6  ;;  %v616_v16 = vld [vmem:[%s1741_s2 + $0x180] sm:$0xff] }
  0xd2   :  { %v548_v29 = vadd.f32 %v545_v21, %v544_v20  ;;  %710 = vmatpush.msra.mxu0 %v617_v12  ;;  %651 = vmatpush.msra.mxu3 %v568_v13 }
  0xd3   :  { %687 = vmatpush.msra.mxu2 %v604_v63  ;;  %670 = vmatpush.msra.mxu1 %v585_v10 }
  0xd4   :  { %711 = vmatpush.msra.mxu0 %v616_v16  ;;  %741 = vmatpush.msrb.mxu3 %v720_v34 }
  0xd5   :  { %v490_v15 = vpop.f32.mrf.mxu3  ;;  %688 = vmatpush.msra.mxu2 %v603_v3  ;;  %671 = vmatpush.msra.mxu1 %v584_v14 }
  0xd6   :  { %v542_v23 = vpop.f32.mrf.mxu2  ;;  %v600_v15 = vld [vmem:[%s1741_s2 + $0x100] sm:$0xff]  ;;  %742 = vmatpush.msrb.mxu3 %v719_v35 }
  0xd7   :  { %v501_v17 = vpop.f32.mrf.mxu1  ;;  %689 = vmatpush.msra.mxu2 %v602_v7 }
  0xd9   :  { %690 = vmatpush.msra.mxu2 %v601_v11 }
  0xdb   :  { %691 = vmatpush.msra.mxu2 %v600_v15 }
  0xdd   :  { %v514_v24 = vpop.f32.mrf.mxu3 }
  0xde   :  { %v1549_v25 = vadd.f32 %v514_v24, %v501_v17 }
  0xdf   :  { %v503_v26 = vpop.f32.mrf.mxu1 }
  0xe0   :  { %v546_v27 = vmul.f32 %v1549_v25, %v1549_v25 }
  0xe2   :  { %v549_v30 = vadd.f32 %v548_v29, %v546_v27 }
  0xe4   :  { %v550_v31 = vadd.f32 %v549_v30, %v547_v28 }
  0xe5   :  { %v516_v32 = vpop.f32.mrf.mxu3 }
  0xe6   :  { %551 = vadd.xlane.f32.xlu0 %v550_v31 }
 0x159   :  { %v552_v17 = vpop.xlane.xlu0 %551 }
 0x15a   :  { %v553_v20 = vmax.f32 %v552_v17, 1e-24 }
 0x15c   :  { %1057 = vrsqrt.f32 %v553_v20  ;;  %vm560_vm2 = vweird.f32 %v553_v20 }
 0x162   :  { %v1058_v21 = vpop.eup %1057 }
 0x163   :  { %v555_v23 = vmul.f32 %v1058_v21, %v553_v20  ;;  %vm561_vm1 = vweird.f32 %v1058_v21 }
 0x164   :  { %vm562_vm3 = vmor %vm560_vm2, %vm561_vm1 }
 0x165   :  { %v556_v24 = vmul.f32 %v1058_v21, %v555_v23 }
 0x167   :  { %v557_v26 = vmul.f32 0.5, %v556_v24 }
 0x169   :  { %v558_v27 = vsub.f32 1.5, %v557_v26 }
 0x16b   :  { %v559_v28 = vmul.f32 %v1058_v21, %v558_v27 }
 0x16d   :  { %v563_v29 = vsel %vm562_vm3, %v1058_v21, %v559_v28 }
 0x16e   :  { %v564_v30 = vmul.f32 %v563_v29, %v1539_v18  ;;  %v565_v31 = vmul.f32 %v563_v29, %v1541_v19  ;;  %v566_v32 = vmul.f32 %v563_v29, %v1549_v25  ;;  %v567_v33 = vmul.f32 %v563_v29, %v1547_v22  ;;  %v718_v18 = vld [vmem:[%s1744_s4 + $0x8] sm:$0xff]  ;;  %v717_v19 = vld [vmem:[%s1744_s4] sm:$0xff]  ;;  %v753_v22 = vld [vmem:[%s1745_s6 + $0x18] sm:$0xff] }
 0x16f   :  { %743 = vmatpush.msrb.mxu3 %v718_v18  ;;  %v752_v25 = vld [vmem:[%s1745_s6 + $0x10] sm:$0xff] }
 0x170   :  { %652 = vmatmul.f32.vlgmr.msra.gmra.mxu3 %v564_v30  ;;  %672 = vmatmul.f32.vlgmr.msra.gmra.mxu1 %v565_v31 }
 0x171   :  { %692 = vmatmul.f32.vlgmr.msra.gmra.mxu2 %v566_v32  ;;  %712 = vmatmul.f32.vlgmr.msra.gmra.mxu0 %v567_v33 }
 0x172   :  { %744 = vmatpush.msrb.mxu3 %v717_v19 }
 0x174   :  { %773 = vmatpush.msra.mxu3 %v753_v22 }
 0x176   :  { %774 = vmatpush.msra.mxu3 %v752_v25 }
 0x178   :  { %775 = vmatpush.msra.mxu3 %v751_v46 }
 0x17a   :  { %776 = vmatpush.msra.mxu3 %v750_v47 }
 0x1ed   :  { %v673_v39 = vpop.f32.mrf.mxu1 }
 0x1ee   :  { %v713_v43 = vpop.f32.mrf.mxu0 }
 0x1f3   :  { %v653_v37 = vpop.f32.mrf.mxu3 }
 0x1f4   :  { %v654_v38 = vadd.f32 %v1054_v36, %v653_v37  ;;  %v693_v41 = vpop.f32.mrf.mxu2 }
 0x1f6   :  { %v674_v40 = vadd.f32 %v673_v39, %v654_v38 }
 0x1f8   :  { %v694_v42 = vadd.f32 %v693_v41, %v674_v40 }
 0x1fa   :  { %v714_v44 = vadd.f32 %v713_v43, %v694_v42 }
 0x1fc   :  { %v716_v45 = vmax.f32 %v714_v44, 0.0 }
 0x1fe   :  { %1002 = vmatmul.msk.f32.vlgmr.msrb.gmra.mxu3 %vm725_vm4, %v716_v45 }
 0x281   :  { %v746_v50 = vpop.f32.mrf.mxu3 }
 0x282   :  { %v747_v51 = vadd.f32 %v1055_v49, %v746_v50 }
 0x284   :  { %v749_v52 = vmax.f32 %v747_v51, 0.0 }
 0x286   :  { %1003 = vmatmul.msk.f32.vlgmr.msra.gmra.mxu3 %vm725_vm4, %v749_v52 }
 0x309   :  { %v778_v54 = vpop.f32.mrf.mxu3 }
 0x30a   :  { %v779_v55 = vadd.f32 %v1056_v53, %v778_v54 }
 0x30c   :  { %v1004_v56 = vmul.f32 -1.442695, %v779_v55 }
 0x30e   :  { %1059 = vpow2.f32 %v1004_v56 }
 0x314   :  { %v1060_v57 = vpop.eup %1059 }
 0x315   :  { %v784_v58 = vadd.f32 1.0, %v1060_v57 }
 0x317   :  { %1061 = vrcp.f32 %v784_v58  ;;  %v796_v62 = vand.u32 2147483648, %v784_v58  ;;  %v794_v0 = vand.u32 2147483647, %v784_v58  ;;  %vm790_vm6 = vweird.f32 %v784_v58 }
 0x319   :  { %v797_v2 = vor.u32 1.1754944e-38, %v796_v62  ;;  %vm795_vm9 = vcmp.eq.f32.partialorder %v794_v0, 8.507059e+37 }
 0x31d   :  { %v1062_v59 = vpop.eup %1061 }
 0x31e   :  { %v786_v60 = vmul.f32 %v1062_v59, %v784_v58  ;;  %vm791_vm5 = vweird.f32 %v1062_v59 }
 0x31f   :  { %vm792_vm7 = vmor %vm790_vm6, %vm791_vm5 }
 0x320   :  { %v787_v61 = vsub.f32 1.0, %v786_v60 }
 0x322   :  { %v788_v63 = vmul.f32 %v1062_v59, %v787_v61 }
 0x324   :  { %v789_v1 = vadd.f32 %v1062_v59, %v788_v63 }
 0x326   :  { %v793_v3 = vsel %vm792_vm7, %v1062_v59, %v789_v1 }
 0x327   :  { %v798_v4 = vsel %vm795_vm9, %v797_v2, %v793_v3 }
 0x328   :  { %801 = vst.msk [vmem:[%s1747_s8] sm:$0xff] %vm800_vm8, %v798_v4 }

</bundles_post_ra>
